<compile_context>
chip_gen: v6e
topology: v6e:2x2x1
jax: 0.10.0
libtpu: 0.0.40
codegen_flags: <defaults>
</compile_context>

<pallas_src>
import jax
import jax.numpy as jnp
from jax.experimental import pallas as pl
from jax.experimental.pallas import tpu as pltpu

# ---------------- feature / model config ----------------
B = 2            # batch for the demo
E1 = 8           # sparse embedding dim
E2 = 8           # seq-sparse embedding dim
L = 8            # seq maxlen
DD = 4           # dense dimension
H1, H2 = 32, 16  # DNN hidden units
VOCAB_SP = 50
VOCAB_SEQ = 30
INPUT_DIM = E1 + E2 + DD          # 20
NUM_COLS = 1 + L + DD             # 13 raw input columns: [item_id | 8 seq ids | 4 dense]

# Layout of the in-kernel design matrix d (one row per example):
#   lanes [0, SP_ROWS)                 : one-hot of item_id (table rows 50..55 are zero pad)
#   lanes [SEQ_OFF, SEQ_OFF+VOCAB_SEQ) : per-vocab counts of hist_cate ids, scaled by 1/len
#   lanes [DENSE_OFF, DENSE_OFF+DD)    : dense features (identity block in the table)
#   lane  ONE_OFF                      : constant 1  (folds b1 into the layer-1 matmul)
SP_ROWS = 56                       # 50 rounded up to a multiple of 8 (sublane alignment)
SEQ_OFF = SP_ROWS                  # 56
DENSE_OFF = SEQ_OFF + VOCAB_SEQ    # 86
ONE_OFF = DENSE_OFF + DD           # 90
D_COLS = ONE_OFF + 1               # 91


# ---------------- Pallas kernel ----------------
def item_kernel(x_ref, tab_ref, w1b1_ref, w2b2_ref, o_ref):
    x = x_ref[...]                                          # (bt, 13) f32
    bt = x.shape[0]
    ids = x[:, :1 + L].astype(jnp.int32)                    # (bt, 9)
    lane = jax.lax.broadcasted_iota(jnp.int32, (bt, D_COLS), 1)

    # --- item_id embedding lookup as a one-hot row (gather rides the MXU) ---
    sp_id = ids[:, 0:1]                                     # (bt, 1)
    d = (lane == sp_id).astype(jnp.float32)

    # --- hist_cate counts (VPU compares only; no XLU reduce, no 3-D block) ---
    cnt = jnp.zeros((bt, D_COLS), jnp.float32)
    pad_cnt = jnp.zeros((bt, 1), jnp.float32)
    for l in range(L):                                      # static unroll, L = 8
        sid = ids[:, 1 + l:2 + l]                           # (bt, 1)
        cnt = cnt + (lane == sid + SEQ_OFF).astype(jnp.float32)
        pad_cnt = pad_cnt + (sid == 0).astype(jnp.float32)

    # SequencePoolingLayer(mode='mean', support_masking=True):
    #   divide by (#non-padding + 1e-8); reciprocal on the (idle) EUP slot.
    inv_len = pl.reciprocal(jnp.float32(L) - pad_cnt + 1e-8, approx=True)
    d = d + cnt * inv_len

    # --- dense features + constant-1 column (folds b1 into the first matmul) ---
    for j in range(DD):
        d = d + (lane == DENSE_OFF + j).astype(jnp.float32) * x[:, 1 + L + j:2 + L + j]
    d = d + (lane == ONE_OFF).astype(jnp.float32)

    # gather + mean-pool + concat([sp_emb, pooled, dense, 1]) in ONE matmul
    xin = jnp.dot(d, tab_ref[...], preferred_element_type=jnp.float32)        # (bt, 21)

    # DNN layer 1 (merged W1 with b1 folded via constant column)
    h = jnp.tanh(jnp.dot(xin, w1b1_ref[...], preferred_element_type=jnp.float32))  # (bt, 32)

    # DNN layer 2
    h2 = jnp.dot(h, w2b2_ref[0:H1, :], preferred_element_type=jnp.float32)
    h2 = jnp.tanh(h2 + w2b2_ref[H1:H1 + 1, :])                                 # (bt, 16)

    # F.normalize(p=2, dim=1): x / max(||x||, 1e-12) == x * rsqrt(max(sumsq, 1e-24))
    ss = jnp.sum(h2 * h2, axis=1, keepdims=True)
    o_ref[...] = h2 * jax.lax.rsqrt(jnp.maximum(ss, 1e-24))


# ---------------- wrapper ----------------
def _round_up(x, m):
    return (x + m - 1) // m * m


def item_model_pallas(inputs, packed, *, block_b=128):
    b = inputs.shape[0]
    bt = min(block_b, _round_up(b, 8))          # batch tile (multiple of 8 sublanes)
    bp = _round_up(b, bt)
    if bp != b:
        inputs = jnp.pad(inputs, ((0, bp - b), (0, 0)))
    tab, w1b1, w2b2 = packed["tab"], packed["w1b1"], packed["w2b2"]

    out = pl.pallas_call(
        item_kernel,
        out_shape=jax.ShapeDtypeStruct((bp, H2), jnp.float32),
        grid=(bp // bt,),
        in_specs=[
            pl.BlockSpec((bt, NUM_COLS), lambda i: (i, 0)),      # batch-tiled raw inputs
            pl.BlockSpec(tab.shape, lambda i: (0, 0)),           # tables: VMEM-resident
            pl.BlockSpec(w1b1.shape, lambda i: (0, 0)),          # [W1; b1]: resident
            pl.BlockSpec(w2b2.shape, lambda i: (0, 0)),          # [W2; b2]: resident
        ],
        out_specs=pl.BlockSpec((bt, H2), lambda i: (i, 0)),
        compiler_params=pltpu.CompilerParams(
            dimension_semantics=("parallel",)),                  # 2x on v7x (2 TCs)
    )(inputs, tab, w1b1, w2b2)
    return out[:b]


def forward(inputs, packed, *, block_b=128):
    return item_model_pallas(inputs, packed, block_b=block_b)


def forward_ref(inputs, emb_sp, emb_seq, params):
    """Pure-JAX reference with the original module's semantics."""
    sp_ids = inputs[:, 0].astype(jnp.int32)
    seq_ids = inputs[:, 1:1 + L].astype(jnp.int32)
    dense = inputs[:, 1 + L:1 + L + DD]
    sp_emb = emb_sp[sp_ids]
    seq_emb = emb_seq[seq_ids]
    mask = (seq_ids != 0).astype(jnp.float32)
    lengths = jnp.sum(mask, axis=1, keepdims=True)
    pooled = jnp.sum(seq_emb * mask[:, :, None], axis=1) / (lengths + 1e-8)
    x = jnp.concatenate([sp_emb, pooled, dense], axis=-1)
    h = jnp.tanh(x @ params["w1"] + params["b1"])
    h2 = jnp.tanh(h @ params["w2"] + params["b2"])
    n = jnp.maximum(jnp.linalg.norm(h2, axis=1, keepdims=True), 1e-12)
    return h2 / n


# ---------------- deterministic parameter init & packing ----------------
def init_params(key):
    ks = jax.random.split(key, 6)
    # embeddings ~ N(0, 0.0001) (embeddings_initializer_std)
    emb_sp = jax.random.normal(ks[0], (VOCAB_SP, E1), jnp.float32) * 1e-4
    emb_seq = jax.random.normal(ks[1], (VOCAB_SEQ, E2), jnp.float32) * 1e-4
    # xavier-normal linear weights
    std1 = (2.0 / (INPUT_DIM + H1)) ** 0.5
    std2 = (2.0 / (H1 + H2)) ** 0.5
    w1 = jax.random.normal(ks[2], (INPUT_DIM, H1), jnp.float32) * std1
    w2 = jax.random.normal(ks[3], (H1, H2), jnp.float32) * std2
    b1 = jax.random.normal(ks[4], (1, H1), jnp.float32) * 0.01
    b2 = jax.random.normal(ks[5], (1, H2), jnp.float32) * 0.01
    return emb_sp, emb_seq, dict(w1=w1, b1=b1, w2=w2, b2=b2)


def pack_params(emb_sp, emb_seq, params):
    # Block-diagonal table slab: d (bt,91) @ tab (91,21) -> [sp_emb|pooled|dense|1]
    tab = jnp.zeros((D_COLS, INPUT_DIM + 1), jnp.float32)
    tab = tab.at[:VOCAB_SP, :E1].set(emb_sp)
    tab = tab.at[SEQ_OFF:SEQ_OFF + VOCAB_SEQ, E1:E1 + E2].set(emb_seq.at[0].set(0.0))
    tab = tab.at[DENSE_OFF:DENSE_OFF + DD, E1 + E2:INPUT_DIM].set(jnp.eye(DD, dtype=jnp.float32))
    tab = tab.at[ONE_OFF, INPUT_DIM].set(1.0)
    w1b1 = jnp.concatenate([params["w1"], params["b1"]], axis=0)   # (21, 32)
    w2b2 = jnp.concatenate([params["w2"], params["b2"]], axis=0)   # (33, 16)
    return dict(tab=tab, w1b1=w1b1, w2b2=w2b2)


if __name__ == "__main__":
    key = jax.random.PRNGKey(0)
    k_par, k_sp, k_seq, k_dense = jax.random.split(key, 4)

    emb_sp, emb_seq, params = init_params(k_par)
    packed = pack_params(emb_sp, emb_seq, params)

    # Synthetic model input (B, 13): [sparse id | 8 seq ids | 4 dense]
    sp_ids = jax.random.randint(k_sp, (B, 1), 1, VOCAB_SP)
    seq_ids = jax.random.randint(k_seq, (B, L), 0, VOCAB_SEQ)  # zeros = padding
    dense_vals = jax.random.normal(k_dense, (B, DD), jnp.float32)
    inputs = jnp.concatenate(
        [sp_ids.astype(jnp.float32), seq_ids.astype(jnp.float32), dense_vals],
        axis=-1)

    out = forward(inputs, packed)
    out = jax.block_until_ready(out)

    ref = forward_ref(inputs, emb_sp, emb_seq, params)
    assert out.shape == (B, H2)
    assert jnp.allclose(out, ref, atol=1e-4, rtol=1e-4), float(jnp.max(jnp.abs(out - ref)))

    print("KERNEL_OK")
</pallas_src>

<mosaic_0001>
module attributes {stable_mosaic.version = 11 : i64} {
  func.func @item_kernel(%arg0: i32, %arg1: memref<8x13xf32, #tpu.memory_space<vmem>>, %arg2: memref<91x21xf32, #tpu.memory_space<vmem>>, %arg3: memref<21x32xf32, #tpu.memory_space<vmem>>, %arg4: memref<33x16xf32, #tpu.memory_space<vmem>>, %arg5: memref<8x16xf32, #tpu.memory_space<vmem>>) attributes {dimension_semantics = [#tpu.dimension_semantics<parallel>], iteration_bounds = array<i64: 1>, scalar_prefetch = 0 : i64, scratch_operands = 0 : i64, tpu.core_type = #tpu.core_type<tc>, window_params = [{transform_indices = @transform_0, window_bounds = array<i64: 8, 13>}, {pipeline_mode = #tpu.pipeline_mode<synchronous>, transform_indices = @transform_1, window_bounds = array<i64: 91, 21>}, {pipeline_mode = #tpu.pipeline_mode<synchronous>, transform_indices = @transform_2, window_bounds = array<i64: 21, 32>}, {pipeline_mode = #tpu.pipeline_mode<synchronous>, transform_indices = @transform_3, window_bounds = array<i64: 33, 16>}, {transform_indices = @transform_4, window_bounds = array<i64: 8, 16>}]} {
    %c0 = arith.constant 0 : index
    %c0_0 = arith.constant 0 : index
    %0 = vector.load %arg1[%c0, %c0_0] : memref<8x13xf32, #tpu.memory_space<vmem>>, vector<8x13xf32>
    %1 = vector.extract_strided_slice %0 {offsets = [0, 0], sizes = [8, 9], strides = [1, 1]} : vector<8x13xf32> to vector<8x9xf32>
    %2 = arith.fptosi %1 : vector<8x9xf32> to vector<8x9xi32>
    %3 = tpu.iota {dimensions = array<i32: 1>} : vector<8x91xi32>
    %4 = vector.extract_strided_slice %2 {offsets = [0, 0], sizes = [8, 1], strides = [1, 1]} : vector<8x9xi32> to vector<8x1xi32>
    %5 = vector.broadcast %4 : vector<8x1xi32> to vector<8x91xi32>
    %6 = arith.cmpi eq, %3, %5 : vector<8x91xi32>
    %7 = arith.extui %6 : vector<8x91xi1> to vector<8x91xi32>
    %8 = arith.sitofp %7 : vector<8x91xi32> to vector<8x91xf32>
    %cst = arith.constant 0.000000e+00 : f32
    %9 = vector.broadcast %cst : f32 to vector<8x91xf32>
    %cst_1 = arith.constant 0.000000e+00 : f32
    %10 = vector.broadcast %cst_1 : f32 to vector<8x1xf32>
    %11 = vector.extract_strided_slice %2 {offsets = [0, 1], sizes = [8, 1], strides = [1, 1]} : vector<8x9xi32> to vector<8x1xi32>
    %c56_i32 = arith.constant 56 : i32
    %12 = vector.broadcast %c56_i32 : i32 to vector<8x1xi32>
    %13 = arith.addi %11, %12 : vector<8x1xi32>
    %14 = vector.broadcast %13 : vector<8x1xi32> to vector<8x91xi32>
    %15 = arith.cmpi eq, %3, %14 : vector<8x91xi32>
    %16 = arith.extui %15 : vector<8x91xi1> to vector<8x91xi32>
    %17 = arith.sitofp %16 : vector<8x91xi32> to vector<8x91xf32>
    %18 = arith.addf %9, %17 : vector<8x91xf32>
    %c0_i32 = arith.constant 0 : i32
    %19 = vector.broadcast %c0_i32 : i32 to vector<8x1xi32>
    %20 = arith.cmpi eq, %11, %19 : vector<8x1xi32>
    %21 = arith.extui %20 : vector<8x1xi1> to vector<8x1xi32>
    %22 = arith.sitofp %21 : vector<8x1xi32> to vector<8x1xf32>
    %23 = arith.addf %10, %22 : vector<8x1xf32>
    %24 = vector.extract_strided_slice %2 {offsets = [0, 2], sizes = [8, 1], strides = [1, 1]} : vector<8x9xi32> to vector<8x1xi32>
    %c56_i32_2 = arith.constant 56 : i32
    %25 = vector.broadcast %c56_i32_2 : i32 to vector<8x1xi32>
    %26 = arith.addi %24, %25 : vector<8x1xi32>
    %27 = vector.broadcast %26 : vector<8x1xi32> to vector<8x91xi32>
    %28 = arith.cmpi eq, %3, %27 : vector<8x91xi32>
    %29 = arith.extui %28 : vector<8x91xi1> to vector<8x91xi32>
    %30 = arith.sitofp %29 : vector<8x91xi32> to vector<8x91xf32>
    %31 = arith.addf %18, %30 : vector<8x91xf32>
    %c0_i32_3 = arith.constant 0 : i32
    %32 = vector.broadcast %c0_i32_3 : i32 to vector<8x1xi32>
    %33 = arith.cmpi eq, %24, %32 : vector<8x1xi32>
    %34 = arith.extui %33 : vector<8x1xi1> to vector<8x1xi32>
    %35 = arith.sitofp %34 : vector<8x1xi32> to vector<8x1xf32>
    %36 = arith.addf %23, %35 : vector<8x1xf32>
    %37 = vector.extract_strided_slice %2 {offsets = [0, 3], sizes = [8, 1], strides = [1, 1]} : vector<8x9xi32> to vector<8x1xi32>
    %c56_i32_4 = arith.constant 56 : i32
    %38 = vector.broadcast %c56_i32_4 : i32 to vector<8x1xi32>
    %39 = arith.addi %37, %38 : vector<8x1xi32>
    %40 = vector.broadcast %39 : vector<8x1xi32> to vector<8x91xi32>
    %41 = arith.cmpi eq, %3, %40 : vector<8x91xi32>
    %42 = arith.extui %41 : vector<8x91xi1> to vector<8x91xi32>
    %43 = arith.sitofp %42 : vector<8x91xi32> to vector<8x91xf32>
    %44 = arith.addf %31, %43 : vector<8x91xf32>
    %c0_i32_5 = arith.constant 0 : i32
    %45 = vector.broadcast %c0_i32_5 : i32 to vector<8x1xi32>
    %46 = arith.cmpi eq, %37, %45 : vector<8x1xi32>
    %47 = arith.extui %46 : vector<8x1xi1> to vector<8x1xi32>
    %48 = arith.sitofp %47 : vector<8x1xi32> to vector<8x1xf32>
    %49 = arith.addf %36, %48 : vector<8x1xf32>
    %50 = vector.extract_strided_slice %2 {offsets = [0, 4], sizes = [8, 1], strides = [1, 1]} : vector<8x9xi32> to vector<8x1xi32>
    %c56_i32_6 = arith.constant 56 : i32
    %51 = vector.broadcast %c56_i32_6 : i32 to vector<8x1xi32>
    %52 = arith.addi %50, %51 : vector<8x1xi32>
    %53 = vector.broadcast %52 : vector<8x1xi32> to vector<8x91xi32>
    %54 = arith.cmpi eq, %3, %53 : vector<8x91xi32>
    %55 = arith.extui %54 : vector<8x91xi1> to vector<8x91xi32>
    %56 = arith.sitofp %55 : vector<8x91xi32> to vector<8x91xf32>
    %57 = arith.addf %44, %56 : vector<8x91xf32>
    %c0_i32_7 = arith.constant 0 : i32
    %58 = vector.broadcast %c0_i32_7 : i32 to vector<8x1xi32>
    %59 = arith.cmpi eq, %50, %58 : vector<8x1xi32>
    %60 = arith.extui %59 : vector<8x1xi1> to vector<8x1xi32>
    %61 = arith.sitofp %60 : vector<8x1xi32> to vector<8x1xf32>
    %62 = arith.addf %49, %61 : vector<8x1xf32>
    %63 = vector.extract_strided_slice %2 {offsets = [0, 5], sizes = [8, 1], strides = [1, 1]} : vector<8x9xi32> to vector<8x1xi32>
    %c56_i32_8 = arith.constant 56 : i32
    %64 = vector.broadcast %c56_i32_8 : i32 to vector<8x1xi32>
    %65 = arith.addi %63, %64 : vector<8x1xi32>
    %66 = vector.broadcast %65 : vector<8x1xi32> to vector<8x91xi32>
    %67 = arith.cmpi eq, %3, %66 : vector<8x91xi32>
    %68 = arith.extui %67 : vector<8x91xi1> to vector<8x91xi32>
    %69 = arith.sitofp %68 : vector<8x91xi32> to vector<8x91xf32>
    %70 = arith.addf %57, %69 : vector<8x91xf32>
    %c0_i32_9 = arith.constant 0 : i32
    %71 = vector.broadcast %c0_i32_9 : i32 to vector<8x1xi32>
    %72 = arith.cmpi eq, %63, %71 : vector<8x1xi32>
    %73 = arith.extui %72 : vector<8x1xi1> to vector<8x1xi32>
    %74 = arith.sitofp %73 : vector<8x1xi32> to vector<8x1xf32>
    %75 = arith.addf %62, %74 : vector<8x1xf32>
    %76 = vector.extract_strided_slice %2 {offsets = [0, 6], sizes = [8, 1], strides = [1, 1]} : vector<8x9xi32> to vector<8x1xi32>
    %c56_i32_10 = arith.constant 56 : i32
    %77 = vector.broadcast %c56_i32_10 : i32 to vector<8x1xi32>
    %78 = arith.addi %76, %77 : vector<8x1xi32>
    %79 = vector.broadcast %78 : vector<8x1xi32> to vector<8x91xi32>
    %80 = arith.cmpi eq, %3, %79 : vector<8x91xi32>
    %81 = arith.extui %80 : vector<8x91xi1> to vector<8x91xi32>
    %82 = arith.sitofp %81 : vector<8x91xi32> to vector<8x91xf32>
    %83 = arith.addf %70, %82 : vector<8x91xf32>
    %c0_i32_11 = arith.constant 0 : i32
    %84 = vector.broadcast %c0_i32_11 : i32 to vector<8x1xi32>
    %85 = arith.cmpi eq, %76, %84 : vector<8x1xi32>
    %86 = arith.extui %85 : vector<8x1xi1> to vector<8x1xi32>
    %87 = arith.sitofp %86 : vector<8x1xi32> to vector<8x1xf32>
    %88 = arith.addf %75, %87 : vector<8x1xf32>
    %89 = vector.extract_strided_slice %2 {offsets = [0, 7], sizes = [8, 1], strides = [1, 1]} : vector<8x9xi32> to vector<8x1xi32>
    %c56_i32_12 = arith.constant 56 : i32
    %90 = vector.broadcast %c56_i32_12 : i32 to vector<8x1xi32>
    %91 = arith.addi %89, %90 : vector<8x1xi32>
    %92 = vector.broadcast %91 : vector<8x1xi32> to vector<8x91xi32>
    %93 = arith.cmpi eq, %3, %92 : vector<8x91xi32>
    %94 = arith.extui %93 : vector<8x91xi1> to vector<8x91xi32>
    %95 = arith.sitofp %94 : vector<8x91xi32> to vector<8x91xf32>
    %96 = arith.addf %83, %95 : vector<8x91xf32>
    %c0_i32_13 = arith.constant 0 : i32
    %97 = vector.broadcast %c0_i32_13 : i32 to vector<8x1xi32>
    %98 = arith.cmpi eq, %89, %97 : vector<8x1xi32>
    %99 = arith.extui %98 : vector<8x1xi1> to vector<8x1xi32>
    %100 = arith.sitofp %99 : vector<8x1xi32> to vector<8x1xf32>
    %101 = arith.addf %88, %100 : vector<8x1xf32>
    %102 = vector.extract_strided_slice %2 {offsets = [0, 8], sizes = [8, 1], strides = [1, 1]} : vector<8x9xi32> to vector<8x1xi32>
    %c56_i32_14 = arith.constant 56 : i32
    %103 = vector.broadcast %c56_i32_14 : i32 to vector<8x1xi32>
    %104 = arith.addi %102, %103 : vector<8x1xi32>
    %105 = vector.broadcast %104 : vector<8x1xi32> to vector<8x91xi32>
    %106 = arith.cmpi eq, %3, %105 : vector<8x91xi32>
    %107 = arith.extui %106 : vector<8x91xi1> to vector<8x91xi32>
    %108 = arith.sitofp %107 : vector<8x91xi32> to vector<8x91xf32>
    %109 = arith.addf %96, %108 : vector<8x91xf32>
    %c0_i32_15 = arith.constant 0 : i32
    %110 = vector.broadcast %c0_i32_15 : i32 to vector<8x1xi32>
    %111 = arith.cmpi eq, %102, %110 : vector<8x1xi32>
    %112 = arith.extui %111 : vector<8x1xi1> to vector<8x1xi32>
    %113 = arith.sitofp %112 : vector<8x1xi32> to vector<8x1xf32>
    %114 = arith.addf %101, %113 : vector<8x1xf32>
    %cst_16 = arith.constant 8.000000e+00 : f32
    %115 = vector.broadcast %cst_16 : f32 to vector<8x1xf32>
    %116 = arith.subf %115, %114 : vector<8x1xf32>
    %cst_17 = arith.constant 9.99999993E-9 : f32
    %117 = vector.broadcast %cst_17 : f32 to vector<8x1xf32>
    %118 = arith.addf %116, %117 : vector<8x1xf32>
    %119 = tpu.reciprocal %118 {approx = true} : vector<8x1xf32> -> vector<8x1xf32>
    %120 = vector.broadcast %119 : vector<8x1xf32> to vector<8x91xf32>
    %121 = arith.mulf %109, %120 : vector<8x91xf32>
    %122 = arith.addf %8, %121 : vector<8x91xf32>
    %c86_i32 = arith.constant 86 : i32
    %123 = vector.broadcast %c86_i32 : i32 to vector<8x91xi32>
    %124 = arith.cmpi eq, %3, %123 : vector<8x91xi32>
    %125 = arith.extui %124 : vector<8x91xi1> to vector<8x91xi32>
    %126 = arith.sitofp %125 : vector<8x91xi32> to vector<8x91xf32>
    %127 = vector.extract_strided_slice %0 {offsets = [0, 9], sizes = [8, 1], strides = [1, 1]} : vector<8x13xf32> to vector<8x1xf32>
    %128 = vector.broadcast %127 : vector<8x1xf32> to vector<8x91xf32>
    %129 = arith.mulf %126, %128 : vector<8x91xf32>
    %130 = arith.addf %122, %129 : vector<8x91xf32>
    %c87_i32 = arith.constant 87 : i32
    %131 = vector.broadcast %c87_i32 : i32 to vector<8x91xi32>
    %132 = arith.cmpi eq, %3, %131 : vector<8x91xi32>
    %133 = arith.extui %132 : vector<8x91xi1> to vector<8x91xi32>
    %134 = arith.sitofp %133 : vector<8x91xi32> to vector<8x91xf32>
    %135 = vector.extract_strided_slice %0 {offsets = [0, 10], sizes = [8, 1], strides = [1, 1]} : vector<8x13xf32> to vector<8x1xf32>
    %136 = vector.broadcast %135 : vector<8x1xf32> to vector<8x91xf32>
    %137 = arith.mulf %134, %136 : vector<8x91xf32>
    %138 = arith.addf %130, %137 : vector<8x91xf32>
    %c88_i32 = arith.constant 88 : i32
    %139 = vector.broadcast %c88_i32 : i32 to vector<8x91xi32>
    %140 = arith.cmpi eq, %3, %139 : vector<8x91xi32>
    %141 = arith.extui %140 : vector<8x91xi1> to vector<8x91xi32>
    %142 = arith.sitofp %141 : vector<8x91xi32> to vector<8x91xf32>
    %143 = vector.extract_strided_slice %0 {offsets = [0, 11], sizes = [8, 1], strides = [1, 1]} : vector<8x13xf32> to vector<8x1xf32>
    %144 = vector.broadcast %143 : vector<8x1xf32> to vector<8x91xf32>
    %145 = arith.mulf %142, %144 : vector<8x91xf32>
    %146 = arith.addf %138, %145 : vector<8x91xf32>
    %c89_i32 = arith.constant 89 : i32
    %147 = vector.broadcast %c89_i32 : i32 to vector<8x91xi32>
    %148 = arith.cmpi eq, %3, %147 : vector<8x91xi32>
    %149 = arith.extui %148 : vector<8x91xi1> to vector<8x91xi32>
    %150 = arith.sitofp %149 : vector<8x91xi32> to vector<8x91xf32>
    %151 = vector.extract_strided_slice %0 {offsets = [0, 12], sizes = [8, 1], strides = [1, 1]} : vector<8x13xf32> to vector<8x1xf32>
    %152 = vector.broadcast %151 : vector<8x1xf32> to vector<8x91xf32>
    %153 = arith.mulf %150, %152 : vector<8x91xf32>
    %154 = arith.addf %146, %153 : vector<8x91xf32>
    %c90_i32 = arith.constant 90 : i32
    %155 = vector.broadcast %c90_i32 : i32 to vector<8x91xi32>
    %156 = arith.cmpi eq, %3, %155 : vector<8x91xi32>
    %157 = arith.extui %156 : vector<8x91xi1> to vector<8x91xi32>
    %158 = arith.sitofp %157 : vector<8x91xi32> to vector<8x91xf32>
    %159 = arith.addf %154, %158 : vector<8x91xf32>
    %c0_18 = arith.constant 0 : index
    %c0_19 = arith.constant 0 : index
    %160 = vector.load %arg2[%c0_18, %c0_19] : memref<91x21xf32, #tpu.memory_space<vmem>>, vector<91x21xf32>
    %cst_20 = arith.constant dense<0.000000e+00> : vector<8x21xf32>
    %161 = tpu.matmul %159, %160, %cst_20 {dimension_numbers = #tpu.dot_dimension_numbers<[1], [0], [0], [1], [0, 0, 1, 1], [], []>} : vector<8x91xf32>, vector<91x21xf32>, vector<8x21xf32> -> vector<8x21xf32>
    %c0_21 = arith.constant 0 : index
    %c0_22 = arith.constant 0 : index
    %162 = vector.load %arg3[%c0_21, %c0_22] : memref<21x32xf32, #tpu.memory_space<vmem>>, vector<21x32xf32>
    %cst_23 = arith.constant dense<0.000000e+00> : vector<8x32xf32>
    %163 = tpu.matmul %161, %162, %cst_23 {dimension_numbers = #tpu.dot_dimension_numbers<[1], [0], [0], [1], [0, 0, 1, 1], [], []>} : vector<8x21xf32>, vector<21x32xf32>, vector<8x32xf32> -> vector<8x32xf32>
    %164 = math.tanh %163 : vector<8x32xf32>
    %c0_24 = arith.constant 0 : index
    %c0_25 = arith.constant 0 : index
    %165 = vector.load %arg4[%c0_24, %c0_25] : memref<33x16xf32, #tpu.memory_space<vmem>>, vector<32x16xf32>
    %cst_26 = arith.constant dense<0.000000e+00> : vector<8x16xf32>
    %166 = tpu.matmul %164, %165, %cst_26 {dimension_numbers = #tpu.dot_dimension_numbers<[1], [0], [0], [1], [0, 0, 1, 1], [], []>} : vector<8x32xf32>, vector<32x16xf32>, vector<8x16xf32> -> vector<8x16xf32>
    %c32 = arith.constant 32 : index
    %c0_27 = arith.constant 0 : index
    %167 = vector.load %arg4[%c32, %c0_27] : memref<33x16xf32, #tpu.memory_space<vmem>>, vector<1x16xf32>
    %168 = vector.broadcast %167 : vector<1x16xf32> to vector<8x16xf32>
    %169 = arith.addf %166, %168 : vector<8x16xf32>
    %170 = math.tanh %169 : vector<8x16xf32>
    %171 = arith.mulf %170, %170 : vector<8x16xf32>
    %cst_28 = arith.constant dense<0.000000e+00> : vector<8xf32>
    %172 = vector.multi_reduction <add>, %171, %cst_28 [1] : vector<8x16xf32> to vector<8xf32>
    %173 = vector.shape_cast %172 : vector<8xf32> to vector<8x1xf32>
    %cst_29 = arith.constant 1.000000e-24 : f32
    %174 = vector.broadcast %cst_29 : f32 to vector<8x1xf32>
    %175 = arith.maximumf %173, %174 : vector<8x1xf32>
    %176 = math.rsqrt %175 : vector<8x1xf32>
    %177 = vector.broadcast %176 : vector<8x1xf32> to vector<8x16xf32>
    %178 = arith.mulf %170, %177 : vector<8x16xf32>
    %c0_30 = arith.constant 0 : index
    %c0_31 = arith.constant 0 : index
    %179 = vector.load %arg5[%c0_30, %c0_31] : memref<8x16xf32, #tpu.memory_space<vmem>>, vector<8x16xf32>
    tpu.vector_store %arg5[%c0_30, %c0_31], %178 {strides = array<i32>} : memref<8x16xf32, #tpu.memory_space<vmem>>, vector<8x16xf32>,
    return
  }
  func.func @transform_0(%arg0: i32) -> (i32, i32) {
    %c0_i32 = arith.constant 0 : i32
    %c0_i32_0 = arith.constant 0 : i32
    return %arg0, %c0_i32 : i32, i32
  }
  func.func @transform_1(%arg0: i32) -> (i32, i32) {
    %c0_i32 = arith.constant 0 : i32
    %c0_i32_0 = arith.constant 0 : i32
    %c0_i32_1 = arith.constant 0 : i32
    return %c0_i32, %c0_i32_0 : i32, i32
  }
  func.func @transform_2(%arg0: i32) -> (i32, i32) {
    %c0_i32 = arith.constant 0 : i32
    %c0_i32_0 = arith.constant 0 : i32
    %c0_i32_1 = arith.constant 0 : i32
    return %c0_i32, %c0_i32_0 : i32, i32
  }
  func.func @transform_3(%arg0: i32) -> (i32, i32) {
    %c0_i32 = arith.constant 0 : i32
    %c0_i32_0 = arith.constant 0 : i32
    %c0_i32_1 = arith.constant 0 : i32
    return %c0_i32, %c0_i32_0 : i32, i32
  }
  func.func @transform_4(%arg0: i32) -> (i32, i32) {
    %c0_i32 = arith.constant 0 : i32
    %c0_i32_0 = arith.constant 0 : i32
    return %arg0, %c0_i32 : i32, i32
  }
}

</mosaic_0001>

<bundles_post_ra>
// kernel: tpu_custom_call.1
= control target key start
LH: loop header
LB: loop body
LE: loop exit
PB: predicated region body
PF: predicated region fallthrough
CT: control target
= control target key end

     0   :  { %v607_v2 = vmov 1   ;;  %v608_v3 = vmov 0.0   ;;  %v609_v4 = vmov 2   ;;  %s770_s0 = inlined_call_operand.vmem [shape: f32[8,13], index: 0, kind: input, shape index: {}]   ;;  %s771_s1 = inlined_call_operand.vmem [shape: f32[91,21], index: 1, kind: input, shape index: {}]   ;;  %s772_s2 = inlined_call_operand.vmem [shape: f32[21,32], index: 2, kind: input, shape index: {}]   ;;  %s773_s3 = inlined_call_operand.vmem [shape: f32[33,16], index: 3, kind: input, shape index: {}]   ;;  %s774_s4 = inlined_call_operand.hbm [shape: f32[8,16], index: 4, kind: output, shape index: {}]  }
   0x1   :  { %v658_v0 = vld [vmem:[%s770_s0] sm:$0xff]  ;;  %563 = vset.pattern.permute.xlu1 %v607_v2  ;;  %491 = vmatprep.subr.mxu0 %v608_v3 }
   0x2   :  { %v538_v1 = vtrunc.f32 %v658_v0  ;;  %564 = vset.pattern.permute.xlu0 %v609_v4  ;;  %518 = vmatprep.subr.mxu1 %v608_v3 }
   0x3   :  { %9 = vsyncpa [#allocation3], 0  ;;  %s610_s17 = smov 127   ;;  %s611_s0 = smov 125   ;;  %v617_v8 = vmov 3   ;;  %v618_v9 = vmov 5   ;;  %v20_v50 = vlaneseq }
   0x4   :  { %v539_v5 = vcvt.f32.s32 %v538_v1  ;;  %s612_s18 = smov 126   ;;  %s613_s19 = smov 124   ;;  %v619_v10 = vmov 4   ;;  %v620_v11 = vmov 8   ;;  %v621_v12 = vmov 6   ;;  %v179_v17 = vld [vmem:[%s771_s1 + $0x50] sm:$0xff] }
   0x5   :  { %s614_s20 = smov 123   ;;  %s615_s21 = smov 122   ;;  %v622_v13 = vmov 9   ;;  %v623_v14 = vmov 7   ;;  %v180_v15 = vld [vmem:[%s771_s1 + $0x58] sm:$0x7] }
   0x6   :  { %vm36_vm0 = vcmp.eq.s32.totalorder %v539_v5, 0  ;;  %v28_v7 = vadd.s32 56, %v539_v5  ;;  %s616_s22 = smov 121   ;;  %vm185_vm1 = vcmask 1042432   ;;  %v624_v16 = vmov 12   ;;  %v178_v19 = vld [vmem:[%s771_s1 + $0x48] sm:$0xff] }
   0x7   :  { %v450_v6 = vsel %vm36_vm0, 1.0, %v608_v3  ;;  %492 = vmatpush3.msk.msra.mxu0 %vm185_vm1, %v180_v15  ;;  %v625_v18 = vmov 0   ;;  %v177_v36 = vld [vmem:[%s771_s1 + $0x40] sm:$0xff]  ;;  %v176_v37 = vld [vmem:[%s771_s1 + $0x38] sm:$0xff]  ;;  %v175_v39 = vld [vmem:[%s771_s1 + $0x30] sm:$0xff]  ;;  %v626_v42 = vmov 10  }
   0x8   :  { %48 = vrot.lane.b32.xlu0 %v450_v6, %s610_s17  ;;  %70 = vrot.lane.b32.xlu1 %v450_v6, %s611_s0  ;;  %v174_v40 = vld [vmem:[%s771_s1 + $0x28] sm:$0xff]  ;;  %v173_v41 = vld [vmem:[%s771_s1 + $0x20] sm:$0xff]  ;;  %v627_v45 = vmov 11   ;;  %vm628_vm2 = vmmov 0   ;;  %vm266_vm3 = vcmask 1044480   ;;  %v21_v52 = vand.u32 127, %v20_v50 }
   0x9   :  { %493 = vmatprep.subr.mxu0 %v608_v3  ;;  %v172_v43 = vld [vmem:[%s771_s1 + $0x18] sm:$0xff]  ;;  %v171_v44 = vld [vmem:[%s771_s1 + $0x10] sm:$0xff]  ;;  %v170_v46 = vld [vmem:[%s771_s1 + $0x8] sm:$0xff]  ;;  %515 = vmatprep.mubr.msk.f32.mxu0 %vm628_vm2, %v608_v3  ;;  %s629_s8 = smov [#allocation2]  }
   0xa   :  { %494 = vmatpush3.msra.mxu0 %v179_v17  ;;  %v169_v47 = vld [vmem:[%s771_s1] sm:$0xff]  ;;  %v261_v48 = vld [vmem:[%s772_s2 + $0x10] sm:$0x1f]  ;;  %v260_v49 = vld [vmem:[%s772_s2 + $0x8] sm:$0xff]  ;;  %524 = vmatprep.mubr.msk.f32.mxu1 %vm628_vm2, %v608_v3  ;;  %vm128_vm12 = vcmp.eq.s32.totalorder %v21_v52, 86  ;;  %vm138_vm14 = vcmp.eq.s32.totalorder %v21_v52, 87 }
   0xb   :  { %495 = vmatprep.subr.mxu0 %v608_v3  ;;  %519 = vmatpush3.msk.msra.mxu1 %vm266_vm3, %v261_v48  ;;  %vm147_vm15 = vcmp.eq.s32.totalorder %v21_v52, 88  ;;  %vm156_vm0 = vcmp.eq.s32.totalorder %v21_v52, 89  ;;  %vm165_vm1 = vcmp.eq.s32.totalorder %v21_v52, 90  ;;  %vm181_vm3 = vcmask 744448   ;;  %s440_s9 = sshll.u32 %s629_s8, 4  ;;  %s441_s9 = int_to_ptr.vmem [resolvable:$true] %s440_s9 }
   0xc   :  { %59 = vrot.lane.b32.xlu0 %v450_v6, %s612_s18  ;;  %81 = vrot.lane.b32.xlu1 %v450_v6, %s613_s19  ;;  %s585_s10 = scalar_lea.vmem %s441_s9, 128  ;;  %p590_p1 = scmp.lt.s32.totalorder %s441_s9, %s441_s9 }
   0xd   :  { %496 = vmatpush3.msra.mxu0 %v178_v19  ;;  %520 = vmatprep.subr.mxu1 %v608_v3  ;;  %p586_p0 = scmp.ne.s32.totalorder %s441_s9, %s585_s10  ;;  %p591_p2 = scmp.lt.s32.totalorder %s585_s10, %s585_s10 }
   0xe   :  { %497 = vmatprep.subr.mxu0 %v608_v3  ;;  %521 = vmatpush3.msra.mxu1 %v260_v49 }
   0xf   :  { %498 = vmatpush3.msra.mxu0 %v177_v36  ;;  %522 = vmatprep.subr.mxu1 %v608_v3  ;;  %p592_p3 = por %p591_p2, %p590_p1 }
  0x10   :  { %92 = vrot.lane.b32.xlu0 %v450_v6, %s614_s20  ;;  %103 = vrot.lane.b32.xlu1 %v450_v6, %s615_s21 }
  0x11   :  { %499 = vmatprep.subr.mxu0 %v608_v3  ;;  %p593_p4 = pnand %p592_p3, %p586_p0 }
  0x12   :  { %500 = vmatpush3.msra.mxu0 %v176_v37 }
  0x13   :  { %501 = vmatprep.subr.mxu0 %v608_v3 }
  0x14   :  { %114 = vrot.lane.b32.xlu0 %v450_v6, %s616_s22  ;;  %30 = vperm.xlu1 %563, %v28_v7  }
  0x15   :  { %502 = vmatpush3.msra.mxu0 %v175_v39  ;;  %v343_v39 = vld [vmem:[%s773_s3 + $0x10] sm:$0xff] }
  0x16   :  { %503 = vmatprep.subr.mxu0 %v608_v3 }
  0x17   :  { %504 = vmatpush3.msra.mxu0 %v174_v40  ;;  %v342_v40 = vld [vmem:[%s773_s3 + $0x8] sm:$0xff] }
  0x18   :  { %565 = vset.pattern.permute.xlu1 %v617_v8  ;;  %41 = vperm.xlu0 %564, %v28_v7  }
  0x19   :  { %53 = vperm.xlu1 %565, %v28_v7   ;;  %505 = vmatprep.subr.mxu0 %v608_v3 }
  0x1a   :  { %506 = vmatpush3.msra.mxu0 %v173_v41  ;;  %v341_v41 = vld [vmem:[%s773_s3] sm:$0xff] }
  0x1b   :  { %507 = vmatprep.subr.mxu0 %v608_v3 }
  0x1c   :  { %567 = vset.pattern.permute.xlu0 %v618_v9  ;;  %508 = vmatpush3.msra.mxu0 %v172_v43 }
  0x1d   :  { %566 = vset.pattern.permute.xlu1 %v619_v10  ;;  %75 = vperm.xlu0 %567, %v28_v7  }
  0x1e   :  { %64 = vperm.xlu1 %566, %v28_v7   ;;  %509 = vmatprep.subr.mxu0 %v608_v3 }
  0x1f   :  { %510 = vmatpush3.msra.mxu0 %v171_v44 }
  0x20   :  { %511 = vmatprep.subr.mxu0 %v608_v3 }
  0x21   :  { %570 = vset.pattern.permute.xlu0 %v620_v11  ;;  %512 = vmatpush3.msra.mxu0 %v170_v46 }
  0x22   :  { %568 = vset.pattern.permute.xlu1 %v621_v12  ;;  %108 = vperm.xlu0 %570, %v28_v7  }
  0x23   :  { %86 = vperm.xlu1 %568, %v28_v7   ;;  %513 = vmatprep.subr.mxu0 %v608_v3 }
  0x24   :  { %514 = vmatpush3.msra.mxu0 %v169_v47 }
  0x26   :  { %572 = vset.pattern.permute.xlu0 %v622_v13 }
  0x27   :  { %569 = vset.pattern.permute.xlu1 %v623_v14  ;;  %133 = vperm.xlu0 %572, %v658_v0   ;;  %v458_v14 = vsel %vm128_vm12, 1.0, %v608_v3 }
  0x28   :  { %97 = vperm.xlu1 %569, %v28_v7  }
  0x2b   :  { %576 = vset.pattern.permute.xlu0 %v624_v16 }
  0x2c   :  { %571 = vset.pattern.permute.xlu1 %v625_v18  ;;  %160 = vperm.xlu0 %576, %v658_v0  }
  0x2d   :  { %23 = vperm.xlu1 %571, %v539_v5  }
  0x31   :  { %573 = vset.pattern.permute.xlu1 %v607_v2 }
  0x7a   :  { %v49_v20 = vpop.permute.xlu0 %48  ;;  %v71_v21 = vpop.permute.xlu1 %70 }
  0x7b   :  { %v51_v22 = vadd.f32 %v450_v6, %v49_v20  ;;  %v459_v20 = vsel %vm138_vm14, 1.0, %v608_v3 }
  0x7e   :  { %v60_v23 = vpop.permute.xlu0 %59  ;;  %v82_v24 = vpop.permute.xlu1 %81 }
  0x7f   :  { %v62_v25 = vadd.f32 %v60_v23, %v51_v22 }
  0x81   :  { %v73_v26 = vadd.f32 %v71_v21, %v62_v25  ;;  %v461_v25 = vsel %vm156_vm0, 1.0, %v608_v3 }
  0x82   :  { %v93_v27 = vpop.permute.xlu0 %92  ;;  %v104_v29 = vpop.permute.xlu1 %103 }
  0x83   :  { %v84_v28 = vadd.f32 %v82_v24, %v73_v26  ;;  %v460_v24 = vsel %vm147_vm15, 1.0, %v608_v3 }
  0x85   :  { %v95_v30 = vadd.f32 %v93_v27, %v84_v28 }
  0x86   :  { %v115_v31 = vpop.permute.xlu0 %114 }
  0x87   :  { %v106_v32 = vadd.f32 %v104_v29, %v95_v30 }
  0x89   :  { %v117_v33 = vadd.f32 %v115_v31, %v106_v32  ;;  %v462_v32 = vsel %vm165_vm1, 1.0, %v608_v3 }
  0x8b   :  { %v118_v34 = vsub.f32 8.0, %v117_v33 }
  0x8d   :  { %v119_v35 = vadd.f32 1e-08, %v118_v34 }
  0x8f   :  { %577 = vrcp.f32 %v119_v35  ;;  %v31_v51 = vpop.permute.xlu1 %30  ;;  %v259_v35 = vld [vmem:[%s772_s2] sm:$0xff] }
  0x90   :  { %vm32_vm4 = vcmp.eq.s32.totalorder %v21_v52, %v31_v51  ;;  %523 = vmatpush3.msra.mxu1 %v259_v35 }
  0x91   :  { %v449_v55 = vsel %vm32_vm4, 1.0, %v608_v3  ;;  %527 = vmatprep.subr.mxu1 %v608_v3  ;;  %vm262_vm4 = vcmask 171008  }
  0x93   :  { %v42_v53 = vpop.permute.xlu0 %41 }
  0x94   :  { %v54_v54 = vpop.permute.xlu1 %53  ;;  %vm43_vm5 = vcmp.eq.s32.totalorder %v21_v52, %v42_v53 }
  0x95   :  { %v451_v56 = vsel %vm43_vm5, 1.0, %v608_v3  ;;  %vm55_vm6 = vcmp.eq.s32.totalorder %v21_v52, %v54_v54  ;;  %vm426_vm5 = vcmask 130048  }
  0x96   :  { %v46_v58 = vadd.f32 %v451_v56, %v449_v55  ;;  %v452_v59 = vsel %vm55_vm6, 1.0, %v608_v3 }
  0x98   :  { %v76_v60 = vpop.permute.xlu0 %75  ;;  %v58_v61 = vadd.f32 %v452_v59, %v46_v58 }
  0x99   :  { %v65_v57 = vpop.permute.xlu1 %64  ;;  %vm77_vm8 = vcmp.eq.s32.totalorder %v21_v52, %v76_v60 }
  0x9a   :  { %vm66_vm7 = vcmp.eq.s32.totalorder %v21_v52, %v65_v57  ;;  %v454_v1 = vsel %vm77_vm8, 1.0, %v608_v3 }
  0x9b   :  { %v453_v62 = vsel %vm66_vm7, 1.0, %v608_v3 }
  0x9c   :  { %v578_v38 = vpop.eup %577 }
  0x9d   :  { %123 = vperm.xlu1 %573, %v578_v38   ;;  %v109_v6 = vpop.permute.xlu0 %108  ;;  %v344_v38 = vld [vmem:[%s773_s3 + $0x18] sm:$0xff] }
  0x9e   :  { %v87_v63 = vpop.permute.xlu1 %86  ;;  %vm110_vm11 = vcmp.eq.s32.totalorder %v21_v52, %v109_v6 }
  0x9f   :  { %vm88_vm9 = vcmp.eq.s32.totalorder %v21_v52, %v87_v63  ;;  %v457_v11 = vsel %vm110_vm11, 1.0, %v608_v3 }
  0xa0   :  { %v455_v5 = vsel %vm88_vm9, 1.0, %v608_v3 }
  0xa1   :  { %574 = vset.pattern.permute.xlu1 %v626_v42 }
  0xa2   :  { %142 = vperm.xlu1 %574, %v658_v0   ;;  %v134_v15 = vpop.permute.xlu0 %133 }
  0xa3   :  { %v98_v2 = vpop.permute.xlu1 %97  ;;  %v136_v19 = vmul.f32 %v458_v14, %v134_v15 }
  0xa4   :  { %vm99_vm10 = vcmp.eq.s32.totalorder %v21_v52, %v98_v2 }
  0xa5   :  { %v456_v8 = vsel %vm99_vm10, 1.0, %v608_v3 }
  0xa6   :  { %575 = vset.pattern.permute.xlu1 %v627_v45  ;;  %v467_v45 = vld [vmem:[%s773_s3 + $0x20] ss:$0 sm:$0xff] }
  0xa7   :  { %151 = vperm.xlu1 %575, %v658_v0   ;;  %v69_v0 = vadd.f32 %v453_v62, %v58_v61  ;;  %v161_v26 = vpop.permute.xlu0 %160 }
  0xa8   :  { %v24_v9 = vpop.permute.xlu1 %23  ;;  %v163_v30 = vmul.f32 %v461_v25, %v161_v26 }
  0xa9   :  { %v80_v4 = vadd.f32 %v454_v1, %v69_v0  ;;  %vm25_vm13 = vcmp.eq.s32.totalorder %v21_v52, %v24_v9 }
  0xaa   :  { %v448_v17 = vsel %vm25_vm13, 1.0, %v608_v3 }
  0xab   :  { %v91_v7 = vadd.f32 %v455_v5, %v80_v4 }
  0xad   :  { %v102_v10 = vadd.f32 %v456_v8, %v91_v7 }
  0xaf   :  { %v113_v12 = vadd.f32 %v457_v11, %v102_v10 }
 0x118   :  { %v124_v13 = vpop.permute.xlu1 %123 }
 0x119   :  { %v126_v16 = vmul.f32 %v124_v13, %v113_v12 }
 0x11b   :  { %v127_v18 = vadd.f32 %v448_v17, %v126_v16 }
 0x11d   :  { %v143_v21 = vpop.permute.xlu1 %142  ;;  %v137_v22 = vadd.f32 %v136_v19, %v127_v18 }
 0x11e   :  { %v145_v23 = vmul.f32 %v459_v20, %v143_v21 }
 0x120   :  { %v146_v28 = vadd.f32 %v145_v23, %v137_v22 }
 0x122   :  { %v152_v27 = vpop.permute.xlu1 %151 }
 0x123   :  { %v154_v29 = vmul.f32 %v460_v24, %v152_v27 }
 0x125   :  { %v155_v31 = vadd.f32 %v154_v29, %v146_v28 }
 0x127   :  { %v164_v33 = vadd.f32 %v163_v30, %v155_v31 }
 0x129   :  { %v168_v34 = vadd.f32 %v462_v32, %v164_v33 }
 0x12b   :  { %516 = vmatmul.mubr.msk.f32.vlgmr.msra.gmra.mxu0 %vm181_vm3, %v168_v34 }
 0x1eb   :  { %v255_v36 = vpop.f32.mrf.mxu0 }
 0x1ec   :  { %525 = vmatmul.mubr.msk.f32.vlgmr.msra.gmra.mxu1 %vm262_vm4, %v255_v36 }
 0x1ed   :  { %v517_v37 = vpop.f32.mrf.mxu0  ;;  %535 = vmatprep.mubr.msk.f32.mxu1 %vm628_vm2, %v608_v3  ;;  %528 = vmatpush3.msra.mxu1 %v344_v38  ;;  %vm350_vm2 = vcmask 261120  }
 0x1ee   :  { %529 = vmatprep.subr.mxu1 %v608_v3 }
 0x1ef   :  { %530 = vmatpush3.msra.mxu1 %v343_v39 }
 0x1f0   :  { %531 = vmatprep.subr.mxu1 %v608_v3 }
 0x1f1   :  { %532 = vmatpush3.msra.mxu1 %v342_v40 }
 0x1f2   :  { %533 = vmatprep.subr.mxu1 %v608_v3 }
 0x1f3   :  { %534 = vmatpush3.msra.mxu1 %v341_v41 }
 0x2ac   :  { %v336_v42 = vpop.f32.mrf.mxu1 }
 0x2ad   :  { %579 = vtanh.f32 %v336_v42 }
 0x2ae   :  { %v526_v43 = vpop.f32.mrf.mxu1 }
 0x2ba   :  { %v580_v44 = vpop.eup %579 }
 0x2bb   :  { %536 = vmatmul.mubr.msk.f32.vlgmr.msra.gmra.mxu1 %vm350_vm2, %v580_v44 }
 0x37b   :  { %v420_v46 = vpop.f32.mrf.mxu1 }
 0x37c   :  { %v421_v47 = vadd.f32 %v467_v45, %v420_v46 }
 0x37d   :  { %v537_v48 = vpop.f32.mrf.mxu1 }
 0x37e   :  { %581 = vtanh.f32 %v421_v47 }
 0x38b   :  { %v582_v49 = vpop.eup %581 }
 0x38c   :  { %v425_v50 = vmul.f32 %v582_v49, %v582_v49 }
 0x38e   :  { %v427_v51 = vsel %vm426_vm5, %v425_v50, 0.0 }
 0x38f   :  { %428 = vadd.xlane.f32.xlu1 %v427_v51 }
 0x418   :  { %v429_v3 = vpop.xlane.xlu1 %428 }
 0x419   :  { %v430_v52 = vmax.f32 %v429_v3, 1e-24 }
 0x41b   :  { %583 = vrsqrt.f32 %v430_v52 }
 0x428   :  { %v584_v53 = vpop.eup %583 }
 0x429   :  { %v432_v54 = vmul.f32 %v584_v53, %v582_v49 }
 0x42b   :  { %433 = vst.msk [vmem:[#allocation2] sm:$0xff] %vm426_vm5, %v432_v54 }
 0x42c   :  { %596 = shalt.err (!%p593_p4)
}
 0x42d   :  { %443 = dma.vmem_to_hbm [thread:$0]  %s441_s9, 128, %s774_s4, [#allocation3]  }
 0x42e   :  { %605 = dma.done.wait [#allocation3], 128  }
 0x42f   :  { %606 = vsyncadd [#allocation3], 4294967168 }
 0x430   :  { %447 = vsyncpa [#allocation3], 1 }

</bundles_post_ra>
